<compile_context>
chip_gen: v5e
topology: v5e:2x2
jax: 0.10.0
libtpu: 0.0.40
codegen_flags: <defaults>
</compile_context>

<pallas_src>
import functools

import jax
import jax.numpy as jnp
import numpy as np
from jax.experimental import pallas as pl
from jax.experimental.pallas import tpu as pltpu


def _round_up(x, m):
    return (x + m - 1) // m * m


def _vmem_limit_bytes():
    """~3/4 of physical VMEM, capped at 100 MiB (48 MiB on v7x, 96 MiB on v5e/v6e)."""
    cap = 64 * 1024 * 1024
    try:
        cap = int(getattr(pltpu.get_tpu_info(), "vmem_capacity_bytes", cap))
    except Exception:
        pass
    return int(min(cap * 3 // 4, 100 * 1024 * 1024))


def _fused_blocks_kernel(x_ref, wf_ref, bf_ref, wg_ref, bg_ref, o_ref, *, d_pad):
    """One (tm, 2*Dp) row tile, one block j:
         y1 = x1 + relu(x2 @ Wf + bf);  y2 = x2 + relu(y1 @ Wg + bg)
       The activation lives in o_ref across the (inner, arbitrary) block axis."""
    j = pl.program_id(1)

    # First block of this row tile: seed the resident activation from the HBM input tile.
    @pl.when(j == 0)
    def _():
        o_ref[...] = x_ref[...]

    x2 = o_ref[:, d_pad:]

    # f(x2) = relu(x2 @ Wf + bf)  -- MXU matmul with f32 accumulate; ReLU / adds on the VPU.
    f_out = jnp.maximum(
        jnp.dot(x2, wf_ref[...], preferred_element_type=jnp.float32)
        + bf_ref[...].astype(jnp.float32), 0.0)
    y1 = o_ref[:, :d_pad].astype(jnp.float32) + f_out

    # g(y1) = relu(y1 @ Wg + bg)
    g_out = jnp.maximum(
        jnp.dot(y1.astype(wg_ref.dtype), wg_ref[...],
                preferred_element_type=jnp.float32)
        + bg_ref[...].astype(jnp.float32), 0.0)
    y2 = x2.astype(jnp.float32) + g_out

    # Lane-tile-aligned half writes (d_pad % 128 == 0): no concat, no masked stores.
    o_ref[:, :d_pad] = y1.astype(o_ref.dtype)
    o_ref[:, d_pad:] = y2.astype(o_ref.dtype)
    # TODO(synk): for large-D compute-bound configs on v6e/v7x, sub-tile rows with an unrolled
    # fori_loop so the MXU matmul of chunk k+1 overlaps the VPU relu/add phase of chunk k.


def reversible_sequence(x, params, *, tm=512):
    """Forward of ReversibleSequence (stack of reversible/irreversible blocks), fused.

    x: (B, S, 2D).  params: list of (Wf, bf, Wg, bg) with Wf/Wg: (D, D), bf/bg: (D,) or (1, D).
    """
    n_blocks = len(params)
    if n_blocks == 0:
        return x

    B, S, C = x.shape
    D = C // 2
    M = B * S
    itemsize = jnp.dtype(x.dtype).itemsize

    D_pad = _round_up(D, 128)
    vmem_limit = _vmem_limit_bytes()

    # Row tile: <= ceil(M/2) so the parallel axis has >= 2 steps (v7x 2-TC sharding), then
    # shrink until the double-buffered working set + f32 temporaries fit the VMEM budget.
    tm = max(8, min(tm, _round_up(-(-M // 2), 8)))
    while tm > 64:
        work = itemsize * (4 * tm * 2 * D_pad + 4 * D_pad * D_pad) + 16 * tm * D_pad
        if work <= (vmem_limit * 4) // 5:
            break
        tm //= 2
    tm = max(8, (tm // 8) * 8)
    M_pad = _round_up(M, tm)

    # ---------- one-time layout plumbing (hoisted out of the block loop) ----------
    x2d = x.reshape(M, C)
    if D == D_pad:
        # Zero/thin copy: at most a row pad; column split happens in-kernel at D_pad.
        x_in = x2d if M == M_pad else jnp.pad(x2d, ((0, M_pad - M), (0, 0)))
    else:
        # Split halves once and pad each to a lane-dense column block.  Padded weight rows/cols
        # and biases are zero, so padded columns stay exactly zero through the whole stack.
        x1p = jnp.pad(x2d[:, :D], ((0, M_pad - M), (0, D_pad - D)))
        x2p = jnp.pad(x2d[:, D:], ((0, M_pad - M), (0, D_pad - D)))
        x_in = jnp.concatenate([x1p, x2p], axis=1)

    wf = jnp.stack([jnp.pad(p[0], ((0, D_pad - D), (0, D_pad - D))) for p in params])
    bf = jnp.stack([jnp.pad(jnp.reshape(p[1], (1, -1)), ((0, 0), (0, D_pad - D))) for p in params])
    wg = jnp.stack([jnp.pad(p[2], ((0, D_pad - D), (0, D_pad - D))) for p in params])
    bg = jnp.stack([jnp.pad(jnp.reshape(p[3], (1, -1)), ((0, 0), (0, D_pad - D))) for p in params])

    n_row_tiles = M_pad // tm
    grid = (n_row_tiles, n_blocks)

    cost = pl.CostEstimate(
        flops=4 * n_blocks * M_pad * D_pad * D_pad,        # two (tm,Dp)@(Dp,Dp) per block
        transcendentals=0,
        bytes_accessed=(2 * M_pad * 2 * D_pad              # activation: one read + one write
                        + n_row_tiles * n_blocks * (2 * D_pad * D_pad + 2 * D_pad)
                        ) * itemsize)

    out = pl.pallas_call(
        functools.partial(_fused_blocks_kernel, d_pad=D_pad),
        out_shape=jax.ShapeDtypeStruct((M_pad, 2 * D_pad), x.dtype),
        grid_spec=pltpu.PrefetchScalarGridSpec(
            num_scalar_prefetch=0,
            grid=grid,
            in_specs=[
                # Activation rows: block index constant along the block axis -> DMA'd once per
                # row tile; the kernel only reads it at j == 0.
                pl.BlockSpec((tm, 2 * D_pad), lambda i, j: (i, 0)),
                # Per-block weights / biases, streamed along the inner (block) axis.
                pl.BlockSpec((None, D_pad, D_pad), lambda i, j: (j, 0, 0)),   # Wf[j]
                pl.BlockSpec((None, 1, D_pad), lambda i, j: (j, 0, 0)),       # bf[j]
                pl.BlockSpec((None, D_pad, D_pad), lambda i, j: (j, 0, 0)),   # Wg[j]
                pl.BlockSpec((None, 1, D_pad), lambda i, j: (j, 0, 0)),       # bg[j]
            ],
            # Output block index constant along the block axis -> the row tile stays resident in
            # VMEM across all n_blocks steps and is written back to HBM exactly once.
            out_specs=pl.BlockSpec((tm, 2 * D_pad), lambda i, j: (i, 0)),
        ),
        compiler_params=pltpu.CompilerParams(
            dimension_semantics=("parallel", "arbitrary"),
            vmem_limit_bytes=vmem_limit,
        ),
        cost_estimate=cost,
    )(x_in, wf, bf, wg, bg)

    # ---------- one-time un-pad ----------
    if D == D_pad:
        out = out if M == M_pad else out[:M]
        return out.reshape(B, S, C)
    y1 = out[:M, :D]
    y2 = out[:M, D_pad:D_pad + D]
    return jnp.concatenate([y1, y2], axis=-1).reshape(B, S, C)


def irreversible_block(x, wf, bf, wg, bg, *, tm=512):
    """Single-block forward (IrreversibleBlock / ReversibleBlock.forward)."""
    return reversible_sequence(x, [(wf, bf, wg, bg)], tm=tm)


# ----------------------------- pure-JAX reference -----------------------------

def irreversible_block_ref(x, wf, bf, wg, bg):
    D = x.shape[-1] // 2
    x1, x2 = x[..., :D], x[..., D:]
    y1 = x1 + jnp.maximum(x2 @ wf + jnp.reshape(bf, (1, -1)), 0.0)
    y2 = x2 + jnp.maximum(y1 @ wg + jnp.reshape(bg, (1, -1)), 0.0)
    return jnp.concatenate([y1, y2], axis=-1)


def reversible_sequence_ref(x, params):
    for (wf, bf, wg, bg) in params:
        x = irreversible_block_ref(x, wf, bf, wg, bg)
    return x


def _make_params(key, D, n_blocks):
    params = []
    for i in range(n_blocks):
        k = jax.random.fold_in(key, i)
        kwf, kbf, kwg, kbg = jax.random.split(k, 4)
        params.append((
            jax.random.normal(kwf, (D, D), dtype=jnp.float32) * 0.1,
            jax.random.normal(kbf, (1, D), dtype=jnp.float32) * 0.1,
            jax.random.normal(kwg, (D, D), dtype=jnp.float32) * 0.1,
            jax.random.normal(kbg, (1, D), dtype=jnp.float32) * 0.1,
        ))
    return params


if __name__ == "__main__":
    key = jax.random.PRNGKey(0)

    # Case 1: small, unaligned feature dim (D=32 -> column-padded path), 2 fused blocks.
    B, S, D = 2, 8, 32
    kx, kp = jax.random.split(key)
    x = jax.random.normal(kx, (B, S, 2 * D), dtype=jnp.float32)
    params = _make_params(kp, D, n_blocks=2)
    out = jax.block_until_ready(reversible_sequence(x, params))
    ref = reversible_sequence_ref(x, params)
    np.testing.assert_allclose(np.asarray(out), np.asarray(ref), rtol=1e-5, atol=1e-5)

    # Case 2: lane-aligned fast path (D % 128 == 0, M divisible -> zero wrapper copies),
    # 1 block, 2 row tiles (exercises the parallel row axis).
    B2, S2, D2 = 2, 64, 128
    kx2, kp2 = jax.random.split(jax.random.fold_in(key, 7))
    x2 = jax.random.normal(kx2, (B2, S2, 2 * D2), dtype=jnp.float32)
    params2 = _make_params(kp2, D2, n_blocks=1)
    out2 = jax.block_until_ready(reversible_sequence(x2, params2))
    ref2 = reversible_sequence_ref(x2, params2)
    np.testing.assert_allclose(np.asarray(out2), np.asarray(ref2), rtol=1e-5, atol=1e-5)

    # Case 3: D aligned but ragged M (row-pad-only path) with 3 fused blocks sharing the
    # resident activation tile.  Slightly looser tolerance: 3 stacked default-precision
    # MXU matmuls can differ from the XLA reference by accumulation order only.
    B3, S3, D3 = 1, 20, 128
    kx3, kp3 = jax.random.split(jax.random.fold_in(key, 13))
    x3 = jax.random.normal(kx3, (B3, S3, 2 * D3), dtype=jnp.float32)
    params3 = _make_params(kp3, D3, n_blocks=3)
    out3 = jax.block_until_ready(reversible_sequence(x3, params3))
    ref3 = reversible_sequence_ref(x3, params3)
    np.testing.assert_allclose(np.asarray(out3), np.asarray(ref3), rtol=1e-4, atol=1e-4)

    print("KERNEL_OK")
</pallas_src>

<mosaic_0001>
module attributes {stable_mosaic.version = 11 : i64} {
  func.func @_fused_blocks_kernel(%arg0: i32, %arg1: i32, %arg2: memref<8x256xf32, #tpu.memory_space<vmem>>, %arg3: memref<1x128x128xf32, #tpu.memory_space<vmem>>, %arg4: memref<1x1x128xf32, #tpu.memory_space<vmem>>, %arg5: memref<1x128x128xf32, #tpu.memory_space<vmem>>, %arg6: memref<1x1x128xf32, #tpu.memory_space<vmem>>, %arg7: memref<8x256xf32, #tpu.memory_space<vmem>>) attributes {dimension_semantics = [#tpu.dimension_semantics<parallel>, #tpu.dimension_semantics<arbitrary>], iteration_bounds = array<i64: 2, 2>, scalar_prefetch = 0 : i64, scratch_operands = 0 : i64, tpu.core_type = #tpu.core_type<tc>, window_params = [{transform_indices = @transform_0, window_bounds = array<i64: 8, 256>}, {transform_indices = @transform_1, window_bounds = array<i64: 1, 128, 128>}, {transform_indices = @transform_2, window_bounds = array<i64: 1, 1, 128>}, {transform_indices = @transform_3, window_bounds = array<i64: 1, 128, 128>}, {transform_indices = @transform_4, window_bounds = array<i64: 1, 1, 128>}, {transform_indices = @transform_5, window_bounds = array<i64: 8, 256>}]} {
    %c0_i32 = arith.constant 0 : i32
    %0 = arith.cmpi eq, %arg1, %c0_i32 : i32
    %1 = arith.extui %0 : i1 to i32
    %c0_i32_0 = arith.constant 0 : i32
    %2 = arith.cmpi ne, %1, %c0_i32_0 : i32
    scf.if %2 {
      %c0_22 = arith.constant 0 : index
      %c0_23 = arith.constant 0 : index
      %27 = vector.load %arg2[%c0_22, %c0_23] : memref<8x256xf32, #tpu.memory_space<vmem>>, vector<8x256xf32>
      %c0_24 = arith.constant 0 : index
      %c0_25 = arith.constant 0 : index
      %28 = vector.load %arg7[%c0_24, %c0_25] : memref<8x256xf32, #tpu.memory_space<vmem>>, vector<8x256xf32>
      tpu.vector_store %arg7[%c0_24, %c0_25], %27 {strides = array<i32>} : memref<8x256xf32, #tpu.memory_space<vmem>>, vector<8x256xf32>,
    } else {
    }
    %c0 = arith.constant 0 : index
    %c128 = arith.constant 128 : index
    %3 = vector.load %arg7[%c0, %c128] : memref<8x256xf32, #tpu.memory_space<vmem>>, vector<8x128xf32>
    %c0_1 = arith.constant 0 : index
    %c0_2 = arith.constant 0 : index
    %c0_3 = arith.constant 0 : index
    %4 = vector.load %arg3[%c0_1, %c0_2, %c0_3] : memref<1x128x128xf32, #tpu.memory_space<vmem>>, vector<1x128x128xf32>
    %5 = vector.shape_cast %4 : vector<1x128x128xf32> to vector<128x128xf32>
    %cst = arith.constant dense<0.000000e+00> : vector<8x128xf32>
    %6 = tpu.matmul %3, %5, %cst {dimension_numbers = #tpu.dot_dimension_numbers<[1], [0], [0], [1], [0, 0, 1, 1], [], []>} : vector<8x128xf32>, vector<128x128xf32>, vector<8x128xf32> -> vector<8x128xf32>
    %c0_4 = arith.constant 0 : index
    %c0_5 = arith.constant 0 : index
    %c0_6 = arith.constant 0 : index
    %7 = vector.load %arg4[%c0_4, %c0_5, %c0_6] : memref<1x1x128xf32, #tpu.memory_space<vmem>>, vector<1x1x128xf32>
    %8 = vector.shape_cast %7 : vector<1x1x128xf32> to vector<1x128xf32>
    %9 = vector.broadcast %8 : vector<1x128xf32> to vector<8x128xf32>
    %10 = arith.addf %6, %9 : vector<8x128xf32>
    %cst_7 = arith.constant 0.000000e+00 : f32
    %11 = vector.broadcast %cst_7 : f32 to vector<8x128xf32>
    %12 = arith.maximumf %10, %11 : vector<8x128xf32>
    %c0_8 = arith.constant 0 : index
    %c0_9 = arith.constant 0 : index
    %13 = vector.load %arg7[%c0_8, %c0_9] : memref<8x256xf32, #tpu.memory_space<vmem>>, vector<8x128xf32>
    %14 = arith.addf %13, %12 : vector<8x128xf32>
    %c0_10 = arith.constant 0 : index
    %c0_11 = arith.constant 0 : index
    %c0_12 = arith.constant 0 : index
    %15 = vector.load %arg5[%c0_10, %c0_11, %c0_12] : memref<1x128x128xf32, #tpu.memory_space<vmem>>, vector<1x128x128xf32>
    %16 = vector.shape_cast %15 : vector<1x128x128xf32> to vector<128x128xf32>
    %cst_13 = arith.constant dense<0.000000e+00> : vector<8x128xf32>
    %17 = tpu.matmul %14, %16, %cst_13 {dimension_numbers = #tpu.dot_dimension_numbers<[1], [0], [0], [1], [0, 0, 1, 1], [], []>} : vector<8x128xf32>, vector<128x128xf32>, vector<8x128xf32> -> vector<8x128xf32>
    %c0_14 = arith.constant 0 : index
    %c0_15 = arith.constant 0 : index
    %c0_16 = arith.constant 0 : index
    %18 = vector.load %arg6[%c0_14, %c0_15, %c0_16] : memref<1x1x128xf32, #tpu.memory_space<vmem>>, vector<1x1x128xf32>
    %19 = vector.shape_cast %18 : vector<1x1x128xf32> to vector<1x128xf32>
    %20 = vector.broadcast %19 : vector<1x128xf32> to vector<8x128xf32>
    %21 = arith.addf %17, %20 : vector<8x128xf32>
    %cst_17 = arith.constant 0.000000e+00 : f32
    %22 = vector.broadcast %cst_17 : f32 to vector<8x128xf32>
    %23 = arith.maximumf %21, %22 : vector<8x128xf32>
    %24 = arith.addf %3, %23 : vector<8x128xf32>
    %c0_18 = arith.constant 0 : index
    %c0_19 = arith.constant 0 : index
    %25 = vector.load %arg7[%c0_18, %c0_19] : memref<8x256xf32, #tpu.memory_space<vmem>>, vector<8x128xf32>
    tpu.vector_store %arg7[%c0_18, %c0_19], %14 {strides = array<i32>} : memref<8x256xf32, #tpu.memory_space<vmem>>, vector<8x128xf32>,
    %c0_20 = arith.constant 0 : index
    %c128_21 = arith.constant 128 : index
    %26 = vector.load %arg7[%c0_20, %c128_21] : memref<8x256xf32, #tpu.memory_space<vmem>>, vector<8x128xf32>
    tpu.vector_store %arg7[%c0_20, %c128_21], %24 {strides = array<i32>} : memref<8x256xf32, #tpu.memory_space<vmem>>, vector<8x128xf32>,
    return
  }
  func.func @transform_0(%arg0: i32, %arg1: i32) -> (i32, i32) {
    %c0_i32 = arith.constant 0 : i32
    %c0_i32_0 = arith.constant 0 : i32
    return %arg0, %c0_i32 : i32, i32
  }
  func.func @transform_1(%arg0: i32, %arg1: i32) -> (i32, i32, i32) {
    %c0_i32 = arith.constant 0 : i32
    %c0_i32_0 = arith.constant 0 : i32
    %c0_i32_1 = arith.constant 0 : i32
    return %arg1, %c0_i32, %c0_i32_0 : i32, i32, i32
  }
  func.func @transform_2(%arg0: i32, %arg1: i32) -> (i32, i32, i32) {
    %c0_i32 = arith.constant 0 : i32
    %c0_i32_0 = arith.constant 0 : i32
    %c0_i32_1 = arith.constant 0 : i32
    return %arg1, %c0_i32, %c0_i32_0 : i32, i32, i32
  }
  func.func @transform_3(%arg0: i32, %arg1: i32) -> (i32, i32, i32) {
    %c0_i32 = arith.constant 0 : i32
    %c0_i32_0 = arith.constant 0 : i32
    %c0_i32_1 = arith.constant 0 : i32
    return %arg1, %c0_i32, %c0_i32_0 : i32, i32, i32
  }
  func.func @transform_4(%arg0: i32, %arg1: i32) -> (i32, i32, i32) {
    %c0_i32 = arith.constant 0 : i32
    %c0_i32_0 = arith.constant 0 : i32
    %c0_i32_1 = arith.constant 0 : i32
    return %arg1, %c0_i32, %c0_i32_0 : i32, i32, i32
  }
  func.func @transform_5(%arg0: i32, %arg1: i32) -> (i32, i32) {
    %c0_i32 = arith.constant 0 : i32
    %c0_i32_0 = arith.constant 0 : i32
    return %arg0, %c0_i32 : i32, i32
  }
}

</mosaic_0001>

<bundles_post_ra>
// kernel: tpu_custom_call.1
= control target key start
LH: loop header
LB: loop body
LE: loop exit
PB: predicated region body
PF: predicated region fallthrough
CT: control target
= control target key end

     0   :  { %s1413_s0 = inlined_call_operand.hbm [shape: f32[16,256], index: 0, kind: input, shape index: {}]   ;;  %s1414_s1 = inlined_call_operand.hbm [shape: f32[2,128,128], index: 1, kind: input, shape index: {}]   ;;  %s1415_s2 = inlined_call_operand.hbm [shape: f32[2,1,128], index: 2, kind: input, shape index: {}]   ;;  %s1416_s3 = inlined_call_operand.hbm [shape: f32[2,128,128], index: 3, kind: input, shape index: {}]   ;;  %s1417_s4 = inlined_call_operand.vmem [shape: f32[2,1,128], index: 4, kind: input, shape index: {}]   ;;  %s1418_s5 = inlined_call_operand.hbm [shape: f32[16,256], index: 5, kind: output, shape index: {}]  }
   0x1   :  { %1434 = sst [smem:[#allocation26_spill]] %s1413_s0 }
   0x2   :  { %1435 = sst [smem:[#allocation27_spill]] %s1414_s1 }
   0x3   :  { %1436 = sst [smem:[#allocation28_spill]] %s1415_s2 }
   0x4   :  { %1437 = sst [smem:[#allocation29_spill]] %s1418_s5 }
   0x5   :  { %10 = vsyncpa [#allocation3], 0 }
   0x6   :  { %12 = vsyncpa [#allocation3 + $0x1], 0 }
   0x7   :  { %13 = vsyncpa [#allocation6], 0 }
   0x8   :  { %15 = vsyncpa [#allocation6 + $0x1], 0 }
   0x9   :  { %16 = vsyncpa [#allocation9], 0 }
   0xa   :  { %18 = vsyncpa [#allocation9 + $0x1], 0 }
   0xb   :  { %19 = vsyncpa [#allocation4], 0 }
   0xc   :  { %21 = vsyncpa [#allocation4 + $0x1], 0  ;;  %s1083_s18 = smov 0   ;;  %s1085_s19 = smov 0  }
   0xd   :  { %s1087_s20 = smov 0   ;;  %s1089_s21 = smov 0  }
   0xe   :  { %s1091_s22 = smov 0   ;;  %s1093_s23 = smov 0  }
   0xf   :  { %s1095_s24 = smov 0   ;;  %s1097_s25 = smov 0  }
  0x10   :  { %s1099_s26 = smov 0   ;;  %s1101_s27 = smov 0  }
  0x11   :  { %s1103_s28 = smov 0  }
  0x12 LB: > { %1438 = sst [smem:[#allocation15_spill]] %s1017_s20  ;;  %p54_p0 = scmp.eq.s32.totalorder %s1049_s28, 0  ;;  %s1049_s28 = sphi %s1103_s28, %s27_s28   ;;  %s1045_s27 = sphi %s1101_s27, %s1476_s27   ;;  %s1041_s26 = sphi %s1099_s26, %s1482_s26   ;;  %s1037_s25 = sphi %s1097_s25, %s1474_s25   ;;  %s1033_s24 = sphi %s1095_s24, %s1481_s24   ;;  %s1029_s23 = sphi %s1093_s23, %s1473_s23   ;;  %s1025_s22 = sphi %s1091_s22, %s1480_s22   ;;  %s1021_s21 = sphi %s1089_s21, %s1479_s21   ;;  %s1017_s20 = sphi %s1087_s20, %s1471_s20   ;;  %s1013_s19 = sphi %s1085_s19, %s1478_s19   ;;  %s1009_s18 = sphi %s1083_s18, %s1477_s18  }
  0x13   : > { %1439 = sst [smem:[#allocation16_spill]] %s1021_s21  ;;  %s72_s29 = sadd.s32 1, %s1017_s20 }
  0x14   : > { %1440 = sst [smem:[#allocation17_spill]] %s1029_s23  ;;  %p79_p1 = scmp.ne.s32.totalorder %s1017_s20, %s1013_s19 }
  0x15   : > { %1441 = sst [smem:[#allocation18_spill]] %s1037_s25  ;;  %p1424_p2 = scmp.lt.s32.totalorder %s1049_s28, 4 }
  0x16   : > { %1442 = sst [smem:[#allocation19_spill]] %s1045_s27  ;;  %s233_s30 = sand.u32 1, %s1049_s28  }
  0x17   : > { %1443 = sst [smem:[#allocation20_spill]] %s1049_s28  ;;  %p81_p3 = por %p79_p1, %p54_p0 }
  0x18   : > { %s1147_s6 = sand.u32 1, %s1017_s20   ;;  %s1422_s7 = sshll.u32 %s1041_s26, 7 }
  0x19   : > { %s1419_s8 = sshll.u32 %s1147_s6, 7  ;;  %s1444_s1 = sld [smem:[#allocation27_spill]] }
  0x1a   : > { %s237_s13 = scalar_lea.vmem [#allocation5], %s1419_s8  ;;  %p1160_p4 = pnand %p1424_p2, %p81_p3 }
  0x1b   : > { %s245_s14 = sshll.u32 %s237_s13, 4  ;;  %p663_p5 = scmp.ge.s32.totalorder %s1049_s28, 1  ;;  %s246_s14 = int_to_ptr.vmem [resolvable:$true] %s245_s14 }
  0x1c   : > { %s1165_s16 = scalar_lea.sflag [#allocation6], %s233_s30  ;;  %s1420_s17 = smov 128  }
  0x1d   : > { %s1421_s9 = smov 8   ;;  %p298_p6 = scmp.lt.s32.totalorder %s1049_s28, 5 }
  0x1e   : > { %s1179_s30 = sadd.s32 4294967295, %s1049_s28   ;;  %s36_s13 = sadd.s32 1, %s1041_s26 }
  0x1f   : > { %s242_s11 = scalar_lea.hbm %s1444_s1, %s1422_s7  ;;  %p1174_p7 = pnand %p663_p5, %p298_p6 }
  0x20   : > { %s243_s12 = sshll.u32 %s242_s11, 4  ;;  %s651_s11 = sadd.s32 4294967294, %s1049_s28   ;;  %s244_s12 = int_to_ptr.hbm [resolvable:$true] %s243_s12 }
  0x21   : > { %694 = dma.hbm_to_vmem [thread:$0]  (!%p1160_p4), %s244_s12, 2048, %s246_s14, %s1165_s16, %s1420_s17, %s1420_s17, %s1421_s9  }
  0x22   : > { %s39_s8 = sadd.s32 1, %s1045_s27  ;;  %p37_p8 = scmp.ge.s32.totalorder %s36_s13, 2 }
  0x23   : > { %s46_s12 = sadd.s32 1, %s1029_s23  ;;  %p53_p9 = scmp.ne.s32.totalorder %s1029_s23, %s1025_s22 }
  0x24   : > { %p59_p10 = scmp.ne.s32.totalorder %s1025_s22, %s1021_s21  ;;  %s1484_s13 = smov (%p37_p8, %s36_s13), 0 }
  0x25   : > { %1447 = sst [smem:[#allocation21_spill]] %s1484_s13  ;;  %s1486_s8 = smov (!%p37_p8, %s39_s8), %s1045_s27 }
  0x26   : > { %p1197_p11 = por %p54_p0, %p53_p9  ;;  %p60_p12 = scmp.eq.s32.totalorder %s1179_s30, 0 }
  0x27   : > { %p41_p13 = scmp.ge.s32.totalorder %s1486_s8, 2  ;;  %s69_s17 = ssub.s32 %s1041_s26, %s1484_s13 }
  0x28   : > { %p1207_p1 = por %p60_p12, %p59_p10  ;;  %p70_p3 = scmp.eq.s32.totalorder %s69_s17, 0 }
  0x29   : > { %s1488_s8 = smov (%p41_p13, %s1486_s8), 0  ;;  %p85_p0 = scmp.ne.s32.totalorder %s1013_s19, %s1009_s18 }
  0x2a   : > { %1450 = sst [smem:[#allocation22_spill]] %s1488_s8  ;;  %s43_s1 = ssub.s32 %s1045_s27, %s1488_s8 }
  0x2b   : > { %s1216_s7 = scalar_select %p70_p3, %s1017_s20, %s72_s29  }
  0x2c   : > { %p44_p5 = scmp.eq.s32.totalorder %s43_s1, 0  ;;  %p187_p6 = scmp.eq.s32.totalorder %s1179_s30, 3 }
  0x2d   : > { %1451 = sst [smem:[#allocation23_spill]] %s1216_s7  ;;  %p1223_p8 = por %p85_p0, %p60_p12 }
  0x2e   : > { %p193_p2 = scmp.eq.s32.totalorder %s651_s11, 3  ;;  %p1233_p13 = por %p187_p6, %p53_p9 }
  0x2f   : > { %s1228_s17 = scalar_select %p44_p5, %s1029_s23, %s46_s12  }
  0x30   : > { %p1240_p3 = por %p193_p2, %p59_p10  ;;  %s213_s18 = sand.u32 1, %s1029_s23  }
  0x31   : > { %1453 = sst [smem:[#allocation24_spill]] %s1228_s17  ;;  %s674_s29 = sshll.u32 %s1045_s27, 4 }
  0x32   : > { %s1455_s1 = scalar_select %p1240_p3, 1, 0 }
  0x33   : > { %s654_s8 = sshll.u32 %s213_s18, 4  ;;  %s1457_s0 = sld [smem:[#allocation26_spill]] }
  0x34   : > { %1456 = sst [smem:[#allocation25_spill]] %s1455_s1  ;;  %s217_s17 = scalar_lea.vmem [#allocation2], %s654_s8 }
  0x35   : > { %s226_s25 = sshll.u32 %s217_s17, 4  ;;  %p1458_p2 = scmp.lt.s32.totalorder %s1049_s28, 4  ;;  %s227_s25 = int_to_ptr.vmem [resolvable:$true] %s226_s25 }
  0x36   : > { %s1459_s2 = sld [smem:[#allocation28_spill]]  ;;  %s258_s20 = scalar_lea.vmem [#allocation7], %s1147_s6 }
  0x37   : > { %p689_p9 = pnand %p1458_p2, %p1197_p11  ;;  %s265_s7 = sshll.u32 %s258_s20, 4  ;;  %s266_s7 = int_to_ptr.vmem [resolvable:$true] %s265_s7 }
  0x38   : > { %s1460_s8 = sshll.u32 %s1041_s26, 7 }
  0x39   : > { %s222_s11 = scalar_lea.hbm %s1457_s0, %s674_s29  ;;  %s214_s29 = scalar_lea.sflag [#allocation3], %s213_s18 }
  0x3a   : > { %s224_s12 = sshll.u32 %s222_s11, 4  ;;  %s281_s11 = scalar_lea.hbm %s1416_s3, %s1460_s8  ;;  %s225_s12 = int_to_ptr.hbm [resolvable:$true] %s224_s12 }
  0x3b   : > { %691 = dma.hbm_to_vmem [thread:$0]  (!%p689_p9), %s225_s12, 256, %s227_s25, %s214_s29  }
  0x3c   : > { %s261_s27 = scalar_lea.hbm %s1459_s2, %s1041_s26  ;;  %s1461_s0 = sshll.u32 %s1147_s6, 7 }
  0x3d   : > { %s263_s21 = sshll.u32 %s261_s27, 4  ;;  %s276_s28 = scalar_lea.vmem [#allocation8], %s1461_s0  ;;  %s264_s21 = int_to_ptr.hbm [resolvable:$true] %s263_s21 }
  0x3e   : > { %697 = dma.hbm_to_vmem [thread:$0]  (!%p1160_p4), %s264_s21, 16, %s266_s7, %s1165_s16  }
  0x3f   : > { %s284_s23 = sshll.u32 %s276_s28, 4  ;;  %s282_s1 = sshll.u32 %s281_s11, 4  ;;  %s285_s23 = int_to_ptr.vmem [resolvable:$true] %s284_s23  ;;  %s283_s1 = int_to_ptr.hbm [resolvable:$true] %s282_s1 }
  0x40   : > { %s273_s2 = scalar_lea.sflag [#allocation9], %s1147_s6  ;;  %s1462_s27 = smov 8  }
  0x41   : > { %s1463_s18 = smov 128   ;;  %302 = sbr.rel (%p1174_p7) target bundleno = 388 (0x184), region = 40 }
  0x42   : > { %700 = dma.hbm_to_vmem [thread:$0]  (!%p1160_p4), %s283_s1, 2048, %s285_s23, %s273_s2, %s1463_s18, %s1463_s18, %s1462_s27  }
  0x43   : > { %s1277_s21 = sand.u32 (!%p1174_p7), 1, %s1025_s22  }
  0x44   : > { %s664_s0 = sshll.u32 (!%p1174_p7), %s1277_s21, 4  ;;  %s305_s25 = scalar_lea.sflag (!%p1174_p7), [#allocation3], %s1277_s21 }
  0x45   : > { %s308_s28 = scalar_lea.vmem (!%p1174_p7), [#allocation2], %s664_s0 }
  0x46   : > { %992 = dma.done.wait (%p1207_p1), %s305_s25, 256  }
  0x47   : > { %994 = vsyncadd (%p1207_p1), %s305_s25, 4294967040  ;;  %s314_s2 = sand.u32 1, %s1179_s30   ;;  %s1287_s6 = sand.u32 1, %s1013_s19  }
  0x48   : > { %s665_s15 = sshll.u32 %s1287_s6, 7  ;;  %s315_s16 = scalar_lea.sflag [#allocation6], %s314_s2 }
  0x49   : > { %s1290_s10 = scalar_lea.vmem [#allocation5], %s665_s15 }
  0x4a   : > { %996 = dma.done.wait (%p1223_p8), %s315_s16, 2064  }
  0x4b   : > { %998 = vsyncadd (%p1223_p8), %s315_s16, 4294965232  ;;  %s327_s9 = scalar_lea.vmem [#allocation7], %s1287_s6  ;;  %s334_s12 = scalar_lea.sflag [#allocation9], %s1287_s6 }
  0x4c   : > { %s1298_s20 = scalar_lea.vmem [#allocation8], %s665_s15 }
  0x4d   : > { %1000 = dma.done.wait (%p1223_p8), %s334_s12, 2048  }
  0x4e   : > { %1002 = vsyncadd (%p1223_p8), %s334_s12, 4294965248  ;;  %p382_p4 = scmp.lt.s32.totalorder %s1033_s24, 1  ;;  %s1312_s17 = scalar_lea.vmem [#allocation10], %s664_s0 }
  0x4f   : > { %p668_p7 = scmp.ne.s32.totalorder %s1033_s24, 0 }
  0x50   : > { %s1306_s30 = scalar_select %p382_p4, %s1033_s24, 1 }
  0x51   : > { %388 = sbr.rel (%p668_p7) target bundleno = 89 (0x59), region = 60 }
  0x52   : > { %s384_s8 = scalar_lea.vmem %s1417_s4, %s1306_s30 }
  0x56   : > { %v389_v0 = vld [vmem:[%s308_s28] sm:$0xff]  ;;  %v390_v1 = vld [vmem:[%s308_s28 + $0x8] sm:$0xff] }
  0x57   : > { %391 = vst [vmem:[%s1312_s17] sm:$0xff] %v389_v0 }
  0x58   : > { %392 = vst [vmem:[%s1312_s17 + $0x8] sm:$0xff] %v390_v1 }
  0x59 PF: > { %v409_v2 = vld [vmem:[%s1290_s10 + $0x78] sm:$0xff]  ;;  %v408_v3 = vld [vmem:[%s1290_s10 + $0x70] sm:$0xff]  ;;  %v407_v4 = vld [vmem:[%s1290_s10 + $0x68] sm:$0xff]  ;;  %s1464_s24 = sld [smem:[#allocation18_spill]]  ;;  %s495_s25 = sshll.u32 %s1312_s17, 4  ;;  %s496_s25 = int_to_ptr.vmem [resolvable:$true] %s495_s25 }
  0x5a   : > { %414 = vmatpush.msra.mxu0 %v409_v2  ;;  %v406_v5 = vld [vmem:[%s1290_s10 + $0x60] sm:$0xff]  ;;  %v405_v7 = vld [vmem:[%s1290_s10 + $0x58] sm:$0xff]  ;;  %v450_v9 = vld [vmem:[%s1298_s20 + $0x68] sm:$0xff]  ;;  %s1465_s27 = sld [smem:[#allocation29_spill]]  ;;  %s482_s2 = scalar_lea.sflag [#allocation4], %s1277_s21 }
  0x5b   : > { %v452_v6 = vld [vmem:[%s1298_s20 + $0x78] sm:$0xff]  ;;  %v451_v8 = vld [vmem:[%s1298_s20 + $0x70] sm:$0xff]  ;;  %v449_v11 = vld [vmem:[%s1298_s20 + $0x60] sm:$0xff] }
  0x5c   : > { %415 = vmatpush.msra.mxu0 %v408_v3  ;;  %457 = vmatpush.msra.mxu1 %v452_v6  ;;  %v404_v10 = vld [vmem:[%s1290_s10 + $0x50] sm:$0xff]  ;;  %v403_v12 = vld [vmem:[%s1290_s10 + $0x48] sm:$0xff]  ;;  %v448_v13 = vld [vmem:[%s1298_s20 + $0x58] sm:$0xff] }
  0x5d   : > { %v402_v14 = vld [vmem:[%s1290_s10 + $0x40] sm:$0xff]  ;;  %v447_v15 = vld [vmem:[%s1298_s20 + $0x50] sm:$0xff]  ;;  %v446_v17 = vld [vmem:[%s1298_s20 + $0x48] sm:$0xff] }
  0x5e   : > { %416 = vmatpush.msra.mxu0 %v407_v4  ;;  %458 = vmatpush.msra.mxu1 %v451_v8  ;;  %v401_v16 = vld [vmem:[%s1290_s10 + $0x38] sm:$0xff]  ;;  %v400_v18 = vld [vmem:[%s1290_s10 + $0x30] sm:$0xff]  ;;  %v445_v19 = vld [vmem:[%s1298_s20 + $0x40] sm:$0xff] }
  0x5f   : > { %v399_v20 = vld [vmem:[%s1290_s10 + $0x28] sm:$0xff]  ;;  %v444_v21 = vld [vmem:[%s1298_s20 + $0x38] sm:$0xff]  ;;  %v443_v23 = vld [vmem:[%s1298_s20 + $0x30] sm:$0xff]  ;;  %s677_s13 = sshll.u32 %s1464_s24, 4 }
  0x60   : > { %417 = vmatpush.msra.mxu0 %v406_v5  ;;  %459 = vmatpush.msra.mxu1 %v450_v9  ;;  %v398_v22 = vld [vmem:[%s1290_s10 + $0x20] sm:$0xff]  ;;  %v397_v24 = vld [vmem:[%s1290_s10 + $0x18] sm:$0xff]  ;;  %v442_v25 = vld [vmem:[%s1298_s20 + $0x28] sm:$0xff]  ;;  %s1466_s0 = smov %s1465_s27  ;;  %s493_s18 = scalar_lea.hbm %s1465_s27, %s677_s13 }
  0x61   : > { %v396_v26 = vld [vmem:[%s1290_s10 + $0x10] sm:$0xff]  ;;  %v441_v27 = vld [vmem:[%s1298_s20 + $0x20] sm:$0xff]  ;;  %v440_v31 = vld [vmem:[%s1298_s20 + $0x18] sm:$0xff]  ;;  %s497_s28 = sshll.u32 %s493_s18, 4  ;;  %s498_s28 = int_to_ptr.hbm [resolvable:$true] %s497_s28 }
  0x62   : > { %418 = vmatpush.msra.mxu0 %v405_v7  ;;  %460 = vmatpush.msra.mxu1 %v449_v11  ;;  %v395_v28 = vld [vmem:[%s1290_s10 + $0x8] sm:$0xff]  ;;  %v394_v29 = vld [vmem:[%s1290_s10] sm:$0xff]  ;;  %v439_v32 = vld [vmem:[%s1298_s20 + $0x10] sm:$0xff]  ;;  %s933_s6 = sshra.s32 %s498_s28, 4  ;;  %s934_s6 = int_to_ptr.hbm [resolvable:$true] %s933_s6 }
  0x63   : > { %v393_v30 = vld [vmem:[%s1312_s17 + $0x8] sm:$0xff]  ;;  %v437_v34 = vld [vmem:[%s1298_s20] sm:$0xff]  ;;  %s935_s15 = scalar_lea.hbm %s934_s6, 16  ;;  %p940_p1 = scmp.lt.s32.totalorder %s934_s6, %s1466_s0 }
  0x64   : > { %419 = vmatpush.msra.mxu0 %v404_v10  ;;  %461 = vmatpush.msra.mxu1 %v448_v13  ;;  %v438_v33 = vld [vmem:[%s1298_s20 + $0x8] sm:$0xff]  ;;  %v797_v35 = vld [vmem:[%s327_s9] ss:$0 sm:$0xff]  ;;  %v435_v38 = vld [vmem:[%s1312_s17] sm:$0xff]  ;;  %p936_p10 = scmp.ne.s32.totalorder %s934_s6, %s935_s15  ;;  %s939_s9 = scalar_lea.hbm %s1466_s0, 32 }
  0x65   : > { %v798_v41 = vld [vmem:[%s384_s8] ss:$0 sm:$0xff]  ;;  %p941_p0 = scmp.lt.s32.totalorder %s939_s9, %s935_s15 }
  0x66   : > { %420 = vmatpush.msra.mxu0 %v403_v12  ;;  %462 = vmatpush.msra.mxu1 %v447_v15  ;;  %p937_p11 = pnand %p936_p10, %p1233_p13 }
  0x67   : > { %p942_p5 = por %p941_p0, %p940_p1 }
  0x68   : > { %421 = vmatpush.msra.mxu0 %v402_v14  ;;  %463 = vmatpush.msra.mxu1 %v446_v17  ;;  %p938_p12 = pneg %p937_p11 }
  0x6a   : > { %422 = vmatpush.msra.mxu0 %v401_v16  ;;  %464 = vmatpush.msra.mxu1 %v445_v19  ;;  %p943_p6 = pnand %p942_p5, %p938_p12 }
  0x6c   : > { %423 = vmatpush.msra.mxu0 %v400_v18  ;;  %465 = vmatpush.msra.mxu1 %v444_v21 }
  0x6e   : > { %424 = vmatpush.msra.mxu0 %v399_v20  ;;  %466 = vmatpush.msra.mxu1 %v443_v23 }
  0x70   : > { %425 = vmatpush.msra.mxu0 %v398_v22  ;;  %467 = vmatpush.msra.mxu1 %v442_v25 }
  0x72   : > { %426 = vmatpush.msra.mxu0 %v397_v24  ;;  %468 = vmatpush.msra.mxu1 %v441_v27 }
  0x74   : > { %427 = vmatpush.msra.mxu0 %v396_v26  ;;  %469 = vmatpush.msra.mxu1 %v440_v31 }
  0x76   : > { %428 = vmatpush.msra.mxu0 %v395_v28  ;;  %470 = vmatpush.msra.mxu1 %v439_v32 }
  0x78   : > { %429 = vmatpush.msra.mxu0 %v394_v29  ;;  %471 = vmatpush.msra.mxu1 %v438_v33 }
  0x79   : > { %430 = vmatmul.f32.vlgmr.msra.gmra.mxu0 %v393_v30 }
  0x7a   : > { %472 = vmatpush.msra.mxu1 %v437_v34 }
  0xf6   : > { %v431_v36 = vpop.f32.mrf.mxu0 }
  0xf7   : > { %v432_v37 = vadd.f32 %v797_v35, %v431_v36 }
  0xf9   : > { %v434_v39 = vmax.f32 %v432_v37, 0.0 }
  0xfb   : > { %v436_v40 = vadd.f32 %v435_v38, %v434_v39 }
  0xfd   : > { %473 = vmatmul.f32.vlgmr.msra.gmra.mxu1 %v436_v40  ;;  %479 = vst [vmem:[%s1312_s17] sm:$0xff] %v436_v40 }
 0x17a   : > { %v474_v42 = vpop.f32.mrf.mxu1 }
 0x17b   : > { %v475_v43 = vadd.f32 %v798_v41, %v474_v42 }
 0x17d   : > { %v477_v44 = vmax.f32 %v475_v43, 0.0 }
 0x17f   : > { %v478_v45 = vadd.f32 %v477_v44, %v393_v30 }
 0x181   : > { %480 = vst [vmem:[%s1312_s17 + $0x8] sm:$0xff] %v478_v45 }
 0x182   : > { %946 = shalt.err (!%p943_p6)
}
 0x183   : > { %686 = dma.vmem_to_hbm [thread:$0]  (%p1233_p13), %s496_s25, 256, %s498_s28, %s482_s2  }
 0x184 PF: > { %s1467_s21 = sld [smem:[#allocation20_spill]] }
 0x185   : > { %s1468_s30 = sld [smem:[#allocation16_spill]] }
 0x18a   : > { %p706_p8 = scmp.ge.s32.totalorder %s1467_s21, 2 }
 0x18b   : > { %s509_s29 = sand.u32 1, %s1468_s30  }
 0x18c   : > { %p702_p2 = pnand %p706_p8, %p1240_p3  ;;  %s510_s8 = scalar_lea.sflag [#allocation4], %s509_s29 }
 0x18e   : > { %p703_p9 = pneg %p702_p2 }
 0x190   : > { %1004 = dma.done.wait (%p703_p9), %s510_s8, 256  }
 0x191   : > { %1006 = vsyncadd (%p703_p9), %s510_s8, 4294967040  ;;  %s27_s28 = sadd.s32 1, %s1467_s21   ;;  %s1470_s17 = sld [smem:[#allocation15_spill]] }
 0x192   : > { %p24_p4 = scmp.ge.s32.totalorder %s27_s28, 6   ;;  %s1471_s20 = sld [smem:[#allocation23_spill]] }
 0x193   : > { %s1472_s5 = sld [smem:[#allocation17_spill]]  ;;  %s1477_s18 = smov %s1013_s19 }
 0x194   : > { %s1473_s23 = sld [smem:[#allocation24_spill]]  ;;  %s1479_s21 = smov %s1025_s22 }
 0x195   : > { %s1474_s25 = sld [smem:[#allocation19_spill]]  ;;  %s1481_s24 = smov %s1041_s26 }
 0x196   : > { %s1475_s13 = sld [smem:[#allocation21_spill]] }
 0x197   : > { %s1476_s27 = sld [smem:[#allocation22_spill]]  ;;  %s1478_s19 = smov %s1470_s17 }
 0x198   :  { %26 = sbr.rel (!%p24_p4) target bundleno = 18 (0x12), region = 129 }
 0x199   : > { %s1480_s22 = smov %s1472_s5 }
 0x19c   : > { %s1482_s26 = smov %s1475_s13 }
 0x19d   :  { %516 = vsyncpa [#allocation3], 1 }
 0x19e   :  { %518 = vsyncpa [#allocation3 + $0x1], 1 }
 0x19f   :  { %519 = vsyncpa [#allocation6], 1 }
 0x1a0   :  { %521 = vsyncpa [#allocation6 + $0x1], 1 }
 0x1a1   :  { %522 = vsyncpa [#allocation9], 1 }
 0x1a2   :  { %524 = vsyncpa [#allocation9 + $0x1], 1 }
 0x1a3   :  { %525 = vsyncpa [#allocation4], 1 }
 0x1a4   :  { %527 = vsyncpa [#allocation4 + $0x1], 1 }

</bundles_post_ra>
